<compile_context>
chip_gen: v7x
topology: tpu7x:2x2x1
jax: 0.10.0
libtpu: 0.0.40
codegen_flags: <defaults>
</compile_context>

<pallas_src>
import math
import functools

import jax
import jax.numpy as jnp
import numpy as np
from jax import lax
from jax.experimental import pallas as pl
from jax.experimental.pallas import tpu as pltpu

_LANES = 128
_ROW_ALIGN = 16          # multiple of 8 (f32) and 16 (bf16); keeps half-splits aligned
_MAX_BLOCK_ROWS = 1024   # 1024 * 128 * 4 B = 512 KiB per f32 block (well under VMEM caps)
_TWO_PI = 2.0 * math.pi
_HALF_LOG_2PI = 0.5 * math.log(2.0 * math.pi)


def _cdiv(a, b):
    return -(-a // b)


def _round_up(x, m):
    return _cdiv(x, m) * m


def _plan(total):
    """Plan a lane-dense (rows, 128) slab tiled over rows in aligned blocks."""
    rows = max(_round_up(_cdiv(total, _LANES), _ROW_ALIGN), _ROW_ALIGN)
    num_blocks = _cdiv(rows, _MAX_BLOCK_ROWS)
    block_rows = _round_up(_cdiv(rows, num_blocks), _ROW_ALIGN)
    rows = num_blocks * block_rows
    return rows, block_rows, num_blocks


# ----------------------------------------------------------------------------
# Pallas kernels
# ----------------------------------------------------------------------------
def _gaussian_sample_kernel(mu, sigma, bits_ref, out_ref):
    """N(mu, sigma) samples for one (block_rows, 128) tile via full Box-Muller.

    `bits_ref` holds one uint32 of entropy per output element; each (u1, u2) pair
    produces TWO outputs (cos branch -> first half of the tile, sin branch -> second
    half), so only ~2 transcendentals are spent per sample.
    """
    half = out_ref.shape[0] // 2
    b1 = bits_ref[pl.ds(0, half), :]
    b2 = bits_ref[pl.ds(half, half), :]

    # Mantissa trick: top 23 random bits -> float in [1, 2) -> uniform.
    exp_one = jnp.uint32(0x3F800000)
    nine = jnp.uint32(9)
    v1 = lax.bitcast_convert_type(lax.shift_right_logical(b1, nine) | exp_one, jnp.float32)
    v2 = lax.bitcast_convert_type(lax.shift_right_logical(b2, nine) | exp_one, jnp.float32)
    u1 = 2.0 - v1          # in (0, 1] -> log() is safe
    u2 = v2 - 1.0          # in [0, 1)

    r = jnp.sqrt(-2.0 * jnp.log(u1))
    theta = jnp.float32(_TWO_PI) * u2

    mu_f = jnp.float32(mu)
    sigma_f = jnp.float32(sigma)
    out_ref[pl.ds(0, half), :] = mu_f + sigma_f * (r * jnp.cos(theta))
    out_ref[pl.ds(half, half), :] = mu_f + sigma_f * (r * jnp.sin(theta))


def _gaussian_logprob_kernel(mu, inv_sigma, log_norm, apply_exp, x_ref, out_ref):
    """Elementwise Normal log-density (optionally exp-fused) for one tile."""
    x = x_ref[...].astype(jnp.float32)          # native-dtype read, in-kernel upcast
    z = (x - jnp.float32(mu)) * jnp.float32(inv_sigma)
    logp = jnp.float32(log_norm) - 0.5 * (z * z)
    out_ref[...] = jnp.exp(logp) if apply_exp else logp


# ----------------------------------------------------------------------------
# Wrappers (flatten / pad / pallas_call plumbing only)
# ----------------------------------------------------------------------------
@functools.partial(jax.jit, static_argnums=(0, 2, 3))
def _sample_impl(shape, key, mu, sigma):
    total = int(np.prod(shape)) if shape else 1
    rows, block_rows, num_blocks = _plan(total)

    bits = jax.random.bits(key, (rows, _LANES), dtype=jnp.uint32)
    kern = functools.partial(_gaussian_sample_kernel, float(mu), float(sigma))

    out = pl.pallas_call(
        kern,
        out_shape=jax.ShapeDtypeStruct((rows, _LANES), jnp.float32),
        grid=(num_blocks,),
        in_specs=[pl.BlockSpec((block_rows, _LANES), lambda i: (i, 0))],
        out_specs=pl.BlockSpec((block_rows, _LANES), lambda i: (i, 0)),
        compiler_params=pltpu.CompilerParams(
            dimension_semantics=("parallel",)),   # tiles independent -> megacore OK
    )(bits)
    return out.reshape(-1)[:total].reshape(shape)


@functools.partial(jax.jit, static_argnums=(1, 2, 3))
def _logprob_impl(x, mu, sigma, apply_exp):
    shape = x.shape
    total = int(np.prod(shape)) if shape else 1
    rows, block_rows, num_blocks = _plan(total)
    padded = rows * _LANES

    x_flat = x.reshape(-1)
    if padded != total:
        x_flat = jnp.pad(x_flat, (0, padded - total))
    x2d = x_flat.reshape(rows, _LANES)            # keep native dtype; cast in-kernel

    inv_sigma = 1.0 / float(sigma)
    log_norm = -math.log(float(sigma)) - _HALF_LOG_2PI
    kern = functools.partial(_gaussian_logprob_kernel,
                             float(mu), inv_sigma, log_norm, bool(apply_exp))

    out = pl.pallas_call(
        kern,
        out_shape=jax.ShapeDtypeStruct((rows, _LANES), jnp.float32),
        grid=(num_blocks,),
        in_specs=[pl.BlockSpec((block_rows, _LANES), lambda i: (i, 0))],
        out_specs=pl.BlockSpec((block_rows, _LANES), lambda i: (i, 0)),
        compiler_params=pltpu.CompilerParams(
            dimension_semantics=("parallel",)),
    )(x2d)
    return out.reshape(-1)[:total].reshape(shape)


class GaussianPriorDistribution:
    """JAX/Pallas port of PriorDistribution (GAUSSIAN variant)."""

    GAUSSIAN = 0
    LOGISTIC = 1

    def __init__(self, mu=0.0, log_sigma=0.0, seed=0, validate_logprob=False):
        # Deterministic parameter init (no checkpoint): scalar loc / log-scale.
        self.mu = float(mu)
        self.sigma = float(math.exp(float(log_sigma)))
        self._key = jax.random.PRNGKey(int(seed))
        self.validate_logprob = bool(validate_logprob)   # debug-only NaN check (forces sync)

    # forward(shape) == sample(shape)
    def __call__(self, shape=None):
        return self.sample(shape=shape)

    forward = __call__

    def _next_key(self):
        self._key, sub = jax.random.split(self._key)
        return sub

    def sample(self, shape=None):
        key = self._next_key()                    # new draw every call
        if shape is None:
            return _sample_impl((), key, self.mu, self.sigma)   # scalar draw
        return _sample_impl(tuple(int(s) for s in shape), key, self.mu, self.sigma)

    def log_prob(self, x):
        logp = _logprob_impl(x, self.mu, self.sigma, False)
        if self.validate_logprob:
            # Debug-only: forces a device sync + extra HBM pass.
            assert not bool(jnp.any(jnp.isnan(logp))), \
                "[!] ERROR: Found NaN values in log-prob of distribution."
        return logp

    def prob(self, x):
        # exp fused into the kernel: one HBM pass instead of log_prob + separate exp.
        return _logprob_impl(x, self.mu, self.sigma, True)

    def cdf(self, x):
        # TODO(synk): plain-JAX erf (no dedicated Pallas kernel for the cdf path).
        z = (jnp.asarray(x, jnp.float32) - self.mu) / self.sigma
        return 0.5 * (1.0 + jax.scipy.special.erf(z / math.sqrt(2.0)))

    def icdf(self, x):
        # TODO(synk): plain-JAX erfinv (no dedicated Pallas kernel for the icdf path).
        xf = jnp.asarray(x, jnp.float32)
        return self.mu + self.sigma * math.sqrt(2.0) * jax.scipy.special.erfinv(2.0 * xf - 1.0)

    def info(self):
        return "Gaussian prior (mu=%g, sigma=%g)" % (self.mu, self.sigma)

    @staticmethod
    def get_string_of_distributions():
        return "%i - Gaussian, %i - Logistic" % (
            GaussianPriorDistribution.GAUSSIAN, GaussianPriorDistribution.LOGISTIC)


if __name__ == "__main__":
    B, C, H, W = 2, 4, 16, 16                 # NCHW, typical small CNF latent shape
    prior = GaussianPriorDistribution(mu=0.0, log_sigma=0.0, seed=0)

    # forward pass: sample of the requested shape
    sample = jax.block_until_ready(prior.forward(shape=(B, C, H, W)))
    assert sample.shape == (B, C, H, W) and sample.dtype == jnp.float32
    # loose distributional sanity check (2048 standard-normal draws)
    assert abs(float(jnp.mean(sample))) < 0.15
    assert abs(float(jnp.std(sample)) - 1.0) < 0.15

    # key advances per call -> fresh randomness
    sample2 = jax.block_until_ready(prior.sample(shape=(B, C, H, W)))
    assert not np.allclose(np.asarray(sample), np.asarray(sample2))

    # scalar draw (shape=None)
    scalar = jax.block_until_ready(prior.sample())
    assert scalar.shape == ()

    # log_prob / prob hot paths, verified against a pure-JAX reference
    key = jax.random.PRNGKey(0)
    x = jax.random.normal(key, (B, C, H, W), dtype=jnp.float32)
    logp = jax.block_until_ready(prior.log_prob(x))
    ref = -0.5 * ((np.asarray(x) - prior.mu) / prior.sigma) ** 2 \
          - math.log(prior.sigma) - 0.5 * math.log(2.0 * math.pi)
    np.testing.assert_allclose(np.asarray(logp), ref, rtol=1e-5, atol=1e-5)

    p = jax.block_until_ready(prior.prob(x))
    np.testing.assert_allclose(np.asarray(p), np.exp(ref), rtol=1e-5, atol=1e-5)

    # unaligned shape exercises the padding path
    x_odd = jax.random.normal(jax.random.PRNGKey(1), (3, 5, 7), dtype=jnp.float32)
    logp_odd = jax.block_until_ready(prior.log_prob(x_odd))
    ref_odd = -0.5 * np.asarray(x_odd) ** 2 - 0.5 * math.log(2.0 * math.pi)
    np.testing.assert_allclose(np.asarray(logp_odd), ref_odd, rtol=1e-5, atol=1e-5)

    print("KERNEL_OK")
</pallas_src>

<mosaic_0001>
module attributes {stable_mosaic.version = 11 : i64} {
  func.func @_gaussian_sample_kernel(%arg0: i32, %arg1: memref<16x128xi32, #tpu.memory_space<vmem>>, %arg2: memref<16x128xf32, #tpu.memory_space<vmem>>) attributes {dimension_semantics = [#tpu.dimension_semantics<parallel>], iteration_bounds = array<i64: 1>, scalar_prefetch = 0 : i64, scratch_operands = 0 : i64, tpu.core_type = #tpu.core_type<tc>, window_params = [{transform_indices = @transform_0, window_bounds = array<i64: 16, 128>}, {transform_indices = @transform_1, window_bounds = array<i64: 16, 128>}]} {
    %c0 = arith.constant 0 : index
    %c0_0 = arith.constant 0 : index
    %0 = vector.load %arg1[%c0, %c0_0] : memref<16x128xi32, #tpu.memory_space<vmem>>, vector<8x128xi32>
    %c8 = arith.constant 8 : index
    %c0_1 = arith.constant 0 : index
    %1 = vector.load %arg1[%c8, %c0_1] : memref<16x128xi32, #tpu.memory_space<vmem>>, vector<8x128xi32>
    %c9_i32 = arith.constant 9 : i32
    %2 = vector.broadcast %c9_i32 : i32 to vector<8x128xi32>
    %3 = arith.shrui %0, %2 : vector<8x128xi32>
    %c1065353216_i32 = arith.constant 1065353216 : i32
    %4 = vector.broadcast %c1065353216_i32 : i32 to vector<8x128xi32>
    %5 = arith.ori %3, %4 : vector<8x128xi32>
    %6 = tpu.bitcast %5 : vector<8x128xi32> -> vector<8x128xf32>
    %c9_i32_2 = arith.constant 9 : i32
    %7 = vector.broadcast %c9_i32_2 : i32 to vector<8x128xi32>
    %8 = arith.shrui %1, %7 : vector<8x128xi32>
    %c1065353216_i32_3 = arith.constant 1065353216 : i32
    %9 = vector.broadcast %c1065353216_i32_3 : i32 to vector<8x128xi32>
    %10 = arith.ori %8, %9 : vector<8x128xi32>
    %11 = tpu.bitcast %10 : vector<8x128xi32> -> vector<8x128xf32>
    %cst = arith.constant 2.000000e+00 : f32
    %12 = vector.broadcast %cst : f32 to vector<8x128xf32>
    %13 = arith.subf %12, %6 : vector<8x128xf32>
    %cst_4 = arith.constant 1.000000e+00 : f32
    %14 = vector.broadcast %cst_4 : f32 to vector<8x128xf32>
    %15 = arith.subf %11, %14 : vector<8x128xf32>
    %16 = math.log %13 : vector<8x128xf32>
    %cst_5 = arith.constant -2.000000e+00 : f32
    %17 = vector.broadcast %cst_5 : f32 to vector<8x128xf32>
    %18 = arith.mulf %17, %16 : vector<8x128xf32>
    %19 = math.sqrt %18 : vector<8x128xf32>
    %cst_6 = arith.constant 6.28318548 : f32
    %20 = vector.broadcast %cst_6 : f32 to vector<8x128xf32>
    %21 = arith.mulf %20, %15 : vector<8x128xf32>
    %22 = math.cos %21 : vector<8x128xf32>
    %23 = arith.mulf %19, %22 : vector<8x128xf32>
    %cst_7 = arith.constant 1.000000e+00 : f32
    %24 = vector.broadcast %cst_7 : f32 to vector<8x128xf32>
    %25 = arith.mulf %24, %23 : vector<8x128xf32>
    %cst_8 = arith.constant 0.000000e+00 : f32
    %26 = vector.broadcast %cst_8 : f32 to vector<8x128xf32>
    %27 = arith.addf %26, %25 : vector<8x128xf32>
    %c0_9 = arith.constant 0 : index
    %c0_10 = arith.constant 0 : index
    %28 = vector.load %arg2[%c0_9, %c0_10] : memref<16x128xf32, #tpu.memory_space<vmem>>, vector<8x128xf32>
    tpu.vector_store %arg2[%c0_9, %c0_10], %27 {strides = array<i32>} : memref<16x128xf32, #tpu.memory_space<vmem>>, vector<8x128xf32>,
    %29 = math.sin %21 : vector<8x128xf32>
    %30 = arith.mulf %19, %29 : vector<8x128xf32>
    %cst_11 = arith.constant 1.000000e+00 : f32
    %31 = vector.broadcast %cst_11 : f32 to vector<8x128xf32>
    %32 = arith.mulf %31, %30 : vector<8x128xf32>
    %cst_12 = arith.constant 0.000000e+00 : f32
    %33 = vector.broadcast %cst_12 : f32 to vector<8x128xf32>
    %34 = arith.addf %33, %32 : vector<8x128xf32>
    %c8_13 = arith.constant 8 : index
    %c0_14 = arith.constant 0 : index
    %35 = vector.load %arg2[%c8_13, %c0_14] : memref<16x128xf32, #tpu.memory_space<vmem>>, vector<8x128xf32>
    tpu.vector_store %arg2[%c8_13, %c0_14], %34 {strides = array<i32>} : memref<16x128xf32, #tpu.memory_space<vmem>>, vector<8x128xf32>,
    return
  }
  func.func @transform_0(%arg0: i32) -> (i32, i32) {
    %c0_i32 = arith.constant 0 : i32
    %c0_i32_0 = arith.constant 0 : i32
    return %arg0, %c0_i32 : i32, i32
  }
  func.func @transform_1(%arg0: i32) -> (i32, i32) {
    %c0_i32 = arith.constant 0 : i32
    %c0_i32_0 = arith.constant 0 : i32
    return %arg0, %c0_i32 : i32, i32
  }
}

</mosaic_0001>

<bundles_post_ra>
// kernel: _sample_impl.1
= control target key start
LH: loop header
LB: loop body
LE: loop exit
PB: predicated region body
PF: predicated region fallthrough
CT: control target
= control target key end

     0   :  { %v273_v16 = vmov 683565275   ;;  %v274_v18 = vmov 2475754826   ;;  %v275_v20 = vmov 2131351028   ;;  %s322_s0 = inlined_call_operand.vmem [shape: u32[16,128], index: 0, kind: input, shape index: {}]   ;;  %s323_s1 = inlined_call_operand.vmem [shape: f32[16,128], index: 1, kind: output, shape index: {}]  }
   0x1   :  { %v9_v0 = vld [vmem:[%s322_s0 + $0x8] sm:$0xff]  ;;  %v276_v26 = vmov 2102212464   ;;  %v277_v29 = vmov 920167782   ;;  %v8_v55 = vld [vmem:[%s322_s0] sm:$0xff] }
   0x2   :  { %v13_v1 = vshrl.u32 %v9_v0, 9  ;;  %v278_v32 = vmov 1326507024   ;;  %v10_v57 = vshrl.u32 %v8_v55, 9 }
   0x4   :  { %v14_v2 = vor.u32 1065353216, %v13_v1  ;;  %v11_v61 = vor.u32 1065353216, %v10_v57 }
   0x6   :  { %v246_v3 = vadd.f32 -1.0, %v14_v2  ;;  %v16_v0 = vsub.f32 2.0, %v11_v61 }
   0x8   :  { %v292_v4 = vmul.f32 6.2831855, %v246_v3  ;;  %265 = vlog2.f32 %v16_v0 }
   0xa   :  { %v32_v5 = vand.u32 2139095040, %v292_v4  ;;  %v29_v6 = vand.u32 2147483647, %v292_v4  ;;  %vm31_vm7 = vcmp.lt.s32.totalorder %v292_v4, 0 }
   0xc   :  { %v33_v7 = vshrl.u32 %v32_v5, 23  ;;  %v36_v9 = vand.u32 8388607, %v29_v6  ;;  %vm30_vm8 = vcmp.le.f32.partialorder %v29_v6, 0.7853982 }
   0xe   :  { %v247_v8 = vadd.s32 4294967169, %v33_v7  ;;  %v37_v11 = vor.u32 8388608, %v36_v9 }
  0x10   :  { %v39_v10 = vadd.s32 1, %v247_v8  ;;  %v77_v22 = vshll.u32 %v37_v11, 8 }
  0x12   :  { %vm40_vm0 = vcmp.gt.s32.totalorder %v39_v10, 0 }
  0x13   :  { %v41_v12 = vsel %vm40_vm0, %v39_v10, 0  ;;  %v266_v10 = vpop.eup %265 }
  0x14   :  { %v43_v13 = vand.u32 31, %v41_v12  ;;  %v42_v14 = vshrl.u32 %v41_v12, 5 }
  0x16   :  { %v44_v15 = vsub.s32 32, %v43_v13  ;;  %v46_v17 = vshll.u32 %v273_v16, %v43_v13  ;;  %v49_v19 = vshll.u32 %v274_v18, %v43_v13  ;;  %v52_v21 = vshll.u32 %v275_v20, %v43_v13 }
  0x17   :  { %v55_v28 = vshll.u32 %v276_v26, %v43_v13  ;;  %v58_v31 = vshll.u32 %v277_v29, %v43_v13  ;;  %vm61_vm1 = vcmp.lt.s32.totalorder %v42_v14, 1  ;;  %vm62_vm2 = vcmp.lt.s32.totalorder %v42_v14, 2 }
  0x18   :  { %v45_v23 = vshrl.u32 %v273_v16, %v44_v15  ;;  %v47_v24 = vshrl.u32 %v274_v18, %v44_v15  ;;  %v50_v25 = vshrl.u32 %v275_v20, %v44_v15  ;;  %v53_v27 = vshrl.u32 %v276_v26, %v44_v15 }
  0x19   :  { %v56_v30 = vshrl.u32 %v277_v29, %v44_v15  ;;  %v59_v33 = vshrl.u32 %v278_v32, %v44_v15  ;;  %vm63_vm3 = vcmp.lt.s32.totalorder %v42_v14, 3  ;;  %vm64_vm4 = vcmp.lt.s32.totalorder %v42_v14, 4 }
  0x1a   :  { %v48_v34 = vor.u32 %v47_v24, %v46_v17  ;;  %v51_v35 = vor.u32 %v50_v25, %v49_v19  ;;  %v54_v36 = vor.u32 %v53_v27, %v52_v21  ;;  %v19_v15 = vmul.f32 0.6931472, %v266_v10 }
  0x1b   :  { %v57_v37 = vor.u32 %v56_v30, %v55_v28  ;;  %v60_v38 = vor.u32 %v59_v33, %v58_v31 }
  0x1c   :  { %v65_v39 = vsel %vm61_vm1, %v45_v23, %v48_v34  ;;  %v69_v40 = vsel %vm61_vm1, %v48_v34, %v51_v35  ;;  %v73_v41 = vsel %vm61_vm1, %v51_v35, %v54_v36  ;;  %v66_v42 = vsel %vm64_vm4, %v54_v36, 2102212464 }
  0x1d   :  { %v70_v43 = vsel %vm64_vm4, %v57_v37, 920167782  ;;  %v74_v44 = vsel %vm64_vm4, %v60_v38, 1326507024  ;;  %v67_v45 = vsel %vm63_vm3, %v51_v35, %v66_v42  ;;  %v20_v20 = vmul.f32 -2.0, %v19_v15 }
  0x1e   :  { %v71_v46 = vsel %vm63_vm3, %v54_v36, %v70_v43  ;;  %v75_v47 = vsel %vm63_vm3, %v57_v37, %v74_v44  ;;  %v68_v48 = vsel %vm62_vm2, %v65_v39, %v67_v45  ;;  %vm121_vm1 = vweird.f32 %v292_v4 }
  0x1f   :  { %v72_v49 = vsel %vm62_vm2, %v69_v40, %v71_v46  ;;  %v76_v50 = vsel %vm62_vm2, %v73_v41, %v75_v47  ;;  %v84_v56 = vmul.u32 %v77_v22, %v68_v48  ;;  %267 = vrsqrt.f32 %v20_v20 }
  0x20   :  { %v298_v51 = vmul.u32.u64.low %v77_v22, %v76_v50  ;;  %v299_v52 = vmul.u32.u64.high %v77_v22, %v76_v50, %v298_v51  ;;  %v301_v53 = vmul.u32.u64.low %v77_v22, %v72_v49  ;;  %v302_v54 = vmul.u32.u64.high %v77_v22, %v72_v49, %v301_v53 }
  0x21   :  { %vm23_vm9 = vcmp.eq.f32.partialorder %v20_v20, inf  ;;  %vm25_vm10 = vcmp.eq.f32.partialorder %v20_v20, 0.0  ;;  %v26_v37 = vand.u32 2147483648, %v20_v20 }
  0x22   :  { %vm86_vm5 = vc.u32 %v299_v52, %v301_v53  ;;  %v87_v58 = vadd.s32 1, %v302_v54  ;;  %v85_v9 = vadd.s32 %v301_v53, %v299_v52 }
  0x24   :  { %v88_v59 = vsel %vm86_vm5, %v87_v58, %v302_v54 }
  0x25   :  { %v89_v60 = vadd.s32 %v88_v59, %v84_v56 }
  0x27   :  { %v90_v62 = vadd.s32 536870912, %v89_v60 }
  0x29   :  { %v91_v63 = vshrl.u32 %v90_v62, 30  ;;  %v268_v32 = vpop.eup %267 }
  0x2a   :  { %v22_v35 = vmul.f32 %v268_v32, %v20_v20 }
  0x2b   :  { %v92_v1 = vshll.u32 %v91_v63, 30  ;;  %v115_v24 = vsub.s32 4, %v91_v63 }
  0x2c   :  { %v24_v38 = vsel %vm23_vm9, %v20_v20, %v22_v35 }
  0x2d   :  { %v93_v2 = vsub.s32 %v89_v60, %v92_v1  ;;  %v116_v27 = vsel %vm31_vm7, %v115_v24, %v91_v63  ;;  %v27_v43 = vsel %vm25_vm10, %v26_v37, %v24_v38 }
  0x2e   :  { %v118_v30 = vsel %vm30_vm8, 0, %v116_v27 }
  0x2f   :  { %v95_v3 = vsub.s32 0, %v93_v2  ;;  %v228_v31 = vadd.s32 3, %v118_v30  ;;  %v122_v33 = vand.u32 3, %v118_v30 }
  0x31   :  { %v248_v5 = vmin.u32 %v95_v3, %v93_v2  ;;  %v229_v34 = vand.u32 3, %v228_v31  ;;  %vm127_vm11 = vcmp.eq.s32.totalorder %v122_v33, 2  ;;  %vm124_vm13 = vcmp.eq.s32.totalorder %v122_v33, 0 }
  0x32   :  { %vm123_vm15 = vcmp.lt.s32.totalorder %v122_v33, 2 }
  0x33   :  { %v97_v7 = vclz %v248_v5  ;;  %vm234_vm12 = vcmp.eq.s32.totalorder %v229_v34, 2  ;;  %vm231_vm14 = vcmp.eq.s32.totalorder %v229_v34, 0  ;;  %vm230_vm0 = vcmp.lt.s32.totalorder %v229_v34, 2 }
  0x35   :  { %v249_v8 = vadd.s32 4294967294, %v97_v7 }
  0x37   :  { %vm250_vm6 = vcmp.lt.s32.totalorder %v249_v8, 0 }
  0x38   :  { %v100_v11 = vsel %vm250_vm6, 0, %v249_v8 }
  0x39   :  { %v101_v12 = vsub.s32 32, %v100_v11  ;;  %v102_v13 = vshll.u32 %v93_v2, %v100_v11  ;;  %v105_v14 = vsub.s32 4294967266, %v100_v11 }
  0x3b   :  { %v103_v16 = vshrl.u32 %v85_v9, %v101_v12  ;;  %v106_v17 = vadd.s32 127, %v105_v14 }
  0x3d   :  { %v104_v18 = vor.u32 %v103_v16, %v102_v13  ;;  %v107_v19 = vshll.u32 %v106_v17, 23 }
  0x3f   :  { %v108_v21 = vor.u32 4788187, %v107_v19  ;;  %v111_v22 = vcvt.s32.f32 %v104_v18 }
  0x41   :  { %v109_v23 = vand.u32 2147483647, %v108_v21 }
  0x43   :  { %v112_v25 = vmul.f32 %v111_v22, %v109_v23 }
  0x45   :  { %v113_v26 = vxor.u32 2147483648, %v112_v25 }
  0x47   :  { %v114_v28 = vsel %vm31_vm7, %v113_v26, %v112_v25 }
  0x48   :  { %v117_v29 = vsel %vm30_vm8, %v292_v4, %v114_v28 }
  0x49   :  { %269 = vcosq.f32 %v117_v29 }
  0x4a   :  { %271 = vsinq.f32 %v117_v29 }
  0x53   :  { %v270_v36 = vpop.eup %269 }
  0x54   :  { %v272_v6 = vpop.eup %271  ;;  %v128_v39 = vxor.u32 2147483648, %v270_v36 }
  0x55   :  { %v125_v40 = vxor.u32 2147483648, %v272_v6 }
  0x56   :  { %v129_v41 = vsel %vm127_vm11, %v128_v39, %v272_v6  ;;  %v236_v42 = vsel %vm234_vm12, %v128_v39, %v272_v6 }
  0x57   :  { %v126_v44 = vsel %vm124_vm13, %v270_v36, %v125_v40  ;;  %v233_v45 = vsel %vm231_vm14, %v270_v36, %v125_v40 }
  0x58   :  { %v130_v46 = vsel %vm123_vm15, %v126_v44, %v129_v41  ;;  %v237_v47 = vsel %vm230_vm0, %v233_v45, %v236_v42 }
  0x59   :  { %v131_v48 = vsel %vm121_vm1, nan, %v130_v46  ;;  %v238_v49 = vsel %vm121_vm1, nan, %v237_v47 }
  0x5a   :  { %v132_v50 = vmul.f32 %v131_v48, %v27_v43  ;;  %v239_v51 = vmul.f32 %v238_v49, %v27_v43 }
  0x5c   :  { %134 = vst [vmem:[%s323_s1] sm:$0xff] %v132_v50  ;;  %241 = vst [vmem:[%s323_s1 + $0x8] sm:$0xff] %v239_v51 }

</bundles_post_ra>
